<compile_context>
chip_gen: v6e
topology: v6e:2x2x1
jax: 0.10.0
libtpu: 0.0.40
codegen_flags: <defaults>
</compile_context>

<pallas_src>
import functools

import jax
import jax.numpy as jnp
from jax.experimental import pallas as pl
from jax.experimental.pallas import tpu as pltpu

N_FACTORS = 4           # n in the module (cvxpy variable dim == output_dim)
SOLVER_ITERS = 1000     # fixed-iteration solve of the cvxpy problem
SOLVER_STEP = 0.2
INNER_UNROLL = 8        # solver steps per fori_loop body (visible unroll)
EPS = 1e-12


def _factor_kernel(x_ref, w1_ref, b1_ref, w2_ref, b2_ref, q_ref, out_ref,
                   *, lower, upper):
    x = x_ref[...]                                                     # (B, D)

    # fc1 + LeakyReLU(negative_slope=-0.1)  (x if x>=0 else -0.1*x, per spec)
    h = jnp.dot(x, w1_ref[...], preferred_element_type=jnp.float32) + b1_ref[...]
    h = jnp.where(h >= 0.0, h, -0.1 * h)

    # fc2
    z = jnp.dot(h, w2_ref[...], preferred_element_type=jnp.float32) + b2_ref[...]

    # softmax over dim=1 (runs once -> exact divide is fine)
    z = z - jnp.max(z, axis=1, keepdims=True)
    e = jnp.exp(z)
    p = e / jnp.sum(e, axis=1, keepdims=True)

    # Hardtanh(min_val=lower, max_val=upper)
    p = jnp.clip(p, lower, upper)

    # TODO(synk): `tensor_minmax` is undefined in the source module; assuming
    # standard per-row min-max scaling (p - min) / (max - min), with an eps
    # guard so an all-equal row (possible after softmax+clip) does not NaN.
    pmin = jnp.min(p, axis=1, keepdims=True)
    pmax = jnp.max(p, axis=1, keepdims=True)
    b = (p - pmin) / jnp.maximum(pmax - pmin, EPS)

    # CvxpyLayer:  y* = argmin ||Q_sqrt y||^2  s.t.  y >= 0,  b^T log(y) >= c.
    # The returned quantity w = y*/sum(y*) is invariant to c (rescaling y maps
    # solutions for different c onto each other), so c never enters here.
    # TODO(synk): CvxpyLayer has no clean Pallas equivalent; we solve the same
    # convex program with a fixed-iteration gradient method on the
    # scale-invariant objective g(u) = log(e^u . Q e^u) - (2/sum b) b.u, y=e^u.
    q = q_ref[...]                                   # Q = Q_sqrt^T Q_sqrt (N,N)
    bsum = jnp.maximum(jnp.sum(b, axis=1, keepdims=True), EPS)

    # ---- hoisted loop invariants (keep the 1000-step serial chain minimal) --
    two_step = 2.0 * SOLVER_STEP
    g_scaled = (two_step * b) / bsum                 # step * (2 b / sum b)
    # rows of Q pre-broadcast to (B, N): the in-loop matvec becomes pure
    # VPU FMAs instead of paying MXU systolic push/pop latency every step.
    q_rows = [jnp.broadcast_to(q[i:i + 1, :], b.shape) for i in range(N_FACTORS)]

    def qmatvec(y):
        # (B,N) @ (N,N) via N lane-broadcast FMAs (N == 4).
        acc = y[:, 0:1] * q_rows[0]
        for i in range(1, N_FACTORS):
            acc = acc + y[:, i:i + 1] * q_rows[i]
        return acc

    def solver_step(u):
        y = jnp.exp(u)
        qy = qmatvec(y)
        yqy = jnp.sum(y * qy, axis=1, keepdims=True)
        # u - step * grad,  grad = 2 y.qy / yqy - 2 b / bsum  (constants folded)
        return u + g_scaled - (y * qy) * (two_step * pl.reciprocal(yqy, approx=True))

    assert SOLVER_ITERS % INNER_UNROLL == 0

    def outer_body(_, u):
        for _ in range(INNER_UNROLL):        # visible unroll for the scheduler
            u = solver_step(u)
        # Re-center: the objective is shift-invariant per row, so this is
        # mathematically free and keeps exp(u) away from f32 overflow.
        return u - jnp.max(u, axis=1, keepdims=True)

    u = jax.lax.fori_loop(0, SOLVER_ITERS // INNER_UNROLL, outer_body,
                          jnp.zeros_like(b))

    # w = y / y.sum(dim=1, keepdim=True) == softmax(u).  Exact final divide so
    # rows sum to 1 to f32 precision (runs once; not on the hot path).
    u = u - jnp.max(u, axis=1, keepdims=True)
    eu = jnp.exp(u)
    out_ref[...] = eu / jnp.sum(eu, axis=1, keepdims=True)


def factor_model_forward(x, w1, b1, w2, b2, q_sqrt, lower, upper):
    batch = x.shape[0]
    x2d = x.reshape(batch, -1).astype(jnp.float32)   # x.view(x.size(0), -1)
    d_in, hidden = w1.shape
    n_out = w2.shape[1]
    q = (q_sqrt.T @ q_sqrt).astype(jnp.float32)      # tiny (4,4) glue matmul

    kernel = functools.partial(_factor_kernel, lower=float(lower), upper=float(upper))

    # Advisory cost estimate: the kernel looks tiny by shape but runs a
    # 1000-iteration serial solver; tell XLA's scheduler the real work.
    solver_flops = SOLVER_ITERS * batch * (2 * n_out * n_out + 8 * n_out)
    flops = 2 * batch * d_in * hidden + 2 * batch * hidden * n_out + solver_flops
    transcendentals = SOLVER_ITERS * batch * (n_out + 1) + 4 * batch * n_out
    bytes_accessed = 4 * (x2d.size + w1.size + b1.size + w2.size + b2.size
                          + q.size + batch * n_out)

    return pl.pallas_call(
        kernel,
        out_shape=jax.ShapeDtypeStruct((batch, n_out), jnp.float32),
        grid=(1,),
        in_specs=[
            pl.BlockSpec((batch, d_in), lambda i: (0, 0)),
            pl.BlockSpec((d_in, hidden), lambda i: (0, 0)),
            pl.BlockSpec((1, hidden), lambda i: (0, 0)),
            pl.BlockSpec((hidden, n_out), lambda i: (0, 0)),
            pl.BlockSpec((1, n_out), lambda i: (0, 0)),
            pl.BlockSpec((n_out, n_out), lambda i: (0, 0)),
        ],
        out_specs=pl.BlockSpec((batch, n_out), lambda i: (0, 0)),
        compiler_params=pltpu.CompilerParams(dimension_semantics=("arbitrary",)),
        cost_estimate=pl.CostEstimate(flops=flops,
                                      transcendentals=transcendentals,
                                      bytes_accessed=bytes_accessed),
    )(x2d, w1, b1, w2, b2, q)


if __name__ == "__main__":
    key = jax.random.PRNGKey(0)
    k_x, k_w1, k_b1, k_w2, k_b2, k_q = jax.random.split(key, 6)

    batch, chan, hh, ww = 2, 4, 4, 2       # flattened -> input_dim = 32
    input_dim = chan * hh * ww
    hidden_dim = 32
    output_dim = N_FACTORS                 # must equal n = 4 (cvxpy layer dim)
    lower, upper = 0.1, 0.6

    x = jax.random.normal(k_x, (batch, chan, hh, ww), dtype=jnp.float32)

    # Deterministic PyTorch-style (uniform +-1/sqrt(fan_in)) init.
    s1 = 1.0 / (input_dim ** 0.5)
    w1 = jax.random.uniform(k_w1, (input_dim, hidden_dim), jnp.float32, -s1, s1)
    b1 = jax.random.uniform(k_b1, (1, hidden_dim), jnp.float32, -s1, s1)
    s2 = 1.0 / (hidden_dim ** 0.5)
    w2 = jax.random.uniform(k_w2, (hidden_dim, output_dim), jnp.float32, -s2, s2)
    b2 = jax.random.uniform(k_b2, (1, output_dim), jnp.float32, -s2, s2)

    q_sqrt = jax.random.normal(k_q, (N_FACTORS, N_FACTORS), dtype=jnp.float32)

    out = factor_model_forward(x, w1, b1, w2, b2, q_sqrt, lower, upper)
    out = jax.block_until_ready(out)
    assert out.shape == (batch, output_dim)
    assert bool(jnp.all(jnp.isfinite(out)))
    # rows of w should sum to 1 (portfolio weights)
    assert bool(jnp.all(jnp.abs(jnp.sum(out, axis=1) - 1.0) < 1e-4))
    print("KERNEL_OK")
</pallas_src>

<mosaic_0001>
module attributes {stable_mosaic.version = 11 : i64} {
  func.func @_factor_kernel(%arg0: i32, %arg1: memref<2x32xf32, #tpu.memory_space<vmem>>, %arg2: memref<32x32xf32, #tpu.memory_space<vmem>>, %arg3: memref<1x32xf32, #tpu.memory_space<vmem>>, %arg4: memref<32x4xf32, #tpu.memory_space<vmem>>, %arg5: memref<1x4xf32, #tpu.memory_space<vmem>>, %arg6: memref<4x4xf32, #tpu.memory_space<vmem>>, %arg7: memref<2x4xf32, #tpu.memory_space<vmem>>) attributes {dimension_semantics = [#tpu.dimension_semantics<arbitrary>], iteration_bounds = array<i64: 1>, scalar_prefetch = 0 : i64, scratch_operands = 0 : i64, tpu.core_type = #tpu.core_type<tc>, window_params = [{pipeline_mode = #tpu.pipeline_mode<synchronous>, transform_indices = @transform_0, window_bounds = array<i64: 2, 32>}, {pipeline_mode = #tpu.pipeline_mode<synchronous>, transform_indices = @transform_1, window_bounds = array<i64: 32, 32>}, {pipeline_mode = #tpu.pipeline_mode<synchronous>, transform_indices = @transform_2, window_bounds = array<i64: 1, 32>}, {pipeline_mode = #tpu.pipeline_mode<synchronous>, transform_indices = @transform_3, window_bounds = array<i64: 32, 4>}, {pipeline_mode = #tpu.pipeline_mode<synchronous>, transform_indices = @transform_4, window_bounds = array<i64: 1, 4>}, {pipeline_mode = #tpu.pipeline_mode<synchronous>, transform_indices = @transform_5, window_bounds = array<i64: 4, 4>}, {pipeline_mode = #tpu.pipeline_mode<synchronous>, transform_indices = @transform_6, window_bounds = array<i64: 2, 4>}]} {
    %c0 = arith.constant 0 : index
    %c0_0 = arith.constant 0 : index
    %0 = vector.load %arg1[%c0, %c0_0] : memref<2x32xf32, #tpu.memory_space<vmem>>, vector<2x32xf32>
    %c0_1 = arith.constant 0 : index
    %c0_2 = arith.constant 0 : index
    %1 = vector.load %arg2[%c0_1, %c0_2] : memref<32x32xf32, #tpu.memory_space<vmem>>, vector<32x32xf32>
    %cst = arith.constant dense<0.000000e+00> : vector<2x32xf32>
    %2 = tpu.matmul %0, %1, %cst {dimension_numbers = #tpu.dot_dimension_numbers<[1], [0], [0], [1], [0, 0, 1, 1], [], []>} : vector<2x32xf32>, vector<32x32xf32>, vector<2x32xf32> -> vector<2x32xf32>
    %c0_3 = arith.constant 0 : index
    %c0_4 = arith.constant 0 : index
    %3 = vector.load %arg3[%c0_3, %c0_4] : memref<1x32xf32, #tpu.memory_space<vmem>>, vector<1x32xf32>
    %4 = vector.broadcast %3 : vector<1x32xf32> to vector<2x32xf32>
    %5 = arith.addf %2, %4 : vector<2x32xf32>
    %cst_5 = arith.constant 0.000000e+00 : f32
    %6 = vector.broadcast %cst_5 : f32 to vector<2x32xf32>
    %7 = arith.cmpf oge, %5, %6 : vector<2x32xf32>
    %cst_6 = arith.constant -1.000000e-01 : f32
    %8 = vector.broadcast %cst_6 : f32 to vector<2x32xf32>
    %9 = arith.mulf %8, %5 : vector<2x32xf32>
    %10 = arith.select %7, %5, %9 : vector<2x32xi1>, vector<2x32xf32>
    %c0_7 = arith.constant 0 : index
    %c0_8 = arith.constant 0 : index
    %11 = vector.load %arg4[%c0_7, %c0_8] : memref<32x4xf32, #tpu.memory_space<vmem>>, vector<32x4xf32>
    %cst_9 = arith.constant dense<0.000000e+00> : vector<2x4xf32>
    %12 = tpu.matmul %10, %11, %cst_9 {dimension_numbers = #tpu.dot_dimension_numbers<[1], [0], [0], [1], [0, 0, 1, 1], [], []>} : vector<2x32xf32>, vector<32x4xf32>, vector<2x4xf32> -> vector<2x4xf32>
    %c0_10 = arith.constant 0 : index
    %c0_11 = arith.constant 0 : index
    %13 = vector.load %arg5[%c0_10, %c0_11] : memref<1x4xf32, #tpu.memory_space<vmem>>, vector<1x4xf32>
    %14 = vector.broadcast %13 : vector<1x4xf32> to vector<2x4xf32>
    %15 = arith.addf %12, %14 : vector<2x4xf32>
    %cst_12 = arith.constant dense<0xFF800000> : vector<2xf32>
    %16 = vector.multi_reduction <maximumf>, %15, %cst_12 [1] : vector<2x4xf32> to vector<2xf32>
    %17 = vector.shape_cast %16 : vector<2xf32> to vector<2x1xf32>
    %18 = vector.broadcast %17 : vector<2x1xf32> to vector<2x4xf32>
    %19 = arith.subf %15, %18 : vector<2x4xf32>
    %20 = math.exp %19 : vector<2x4xf32>
    %cst_13 = arith.constant dense<0.000000e+00> : vector<2xf32>
    %21 = vector.multi_reduction <add>, %20, %cst_13 [1] : vector<2x4xf32> to vector<2xf32>
    %22 = vector.shape_cast %21 : vector<2xf32> to vector<2x1xf32>
    %23 = vector.broadcast %22 : vector<2x1xf32> to vector<2x4xf32>
    %24 = arith.divf %20, %23 : vector<2x4xf32>
    %cst_14 = arith.constant 1.000000e-01 : f32
    %cst_15 = arith.constant 6.000000e-01 : f32
    %25 = vector.broadcast %cst_14 : f32 to vector<2x4xf32>
    %26 = arith.maximumf %25, %24 : vector<2x4xf32>
    %27 = vector.broadcast %cst_15 : f32 to vector<2x4xf32>
    %28 = arith.minimumf %27, %26 : vector<2x4xf32>
    %cst_16 = arith.constant dense<0x7F800000> : vector<2xf32>
    %29 = vector.multi_reduction <minimumf>, %28, %cst_16 [1] : vector<2x4xf32> to vector<2xf32>
    %30 = vector.shape_cast %29 : vector<2xf32> to vector<2x1xf32>
    %cst_17 = arith.constant dense<0xFF800000> : vector<2xf32>
    %31 = vector.multi_reduction <maximumf>, %28, %cst_17 [1] : vector<2x4xf32> to vector<2xf32>
    %32 = vector.shape_cast %31 : vector<2xf32> to vector<2x1xf32>
    %33 = vector.broadcast %30 : vector<2x1xf32> to vector<2x4xf32>
    %34 = arith.subf %28, %33 : vector<2x4xf32>
    %35 = arith.subf %32, %30 : vector<2x1xf32>
    %cst_18 = arith.constant 9.99999996E-13 : f32
    %36 = vector.broadcast %cst_18 : f32 to vector<2x1xf32>
    %37 = arith.maximumf %35, %36 : vector<2x1xf32>
    %38 = vector.broadcast %37 : vector<2x1xf32> to vector<2x4xf32>
    %39 = arith.divf %34, %38 : vector<2x4xf32>
    %c0_19 = arith.constant 0 : index
    %c0_20 = arith.constant 0 : index
    %40 = vector.load %arg6[%c0_19, %c0_20] : memref<4x4xf32, #tpu.memory_space<vmem>>, vector<4x4xf32>
    %cst_21 = arith.constant dense<0.000000e+00> : vector<2xf32>
    %41 = vector.multi_reduction <add>, %39, %cst_21 [1] : vector<2x4xf32> to vector<2xf32>
    %42 = vector.shape_cast %41 : vector<2xf32> to vector<2x1xf32>
    %cst_22 = arith.constant 9.99999996E-13 : f32
    %43 = vector.broadcast %cst_22 : f32 to vector<2x1xf32>
    %44 = arith.maximumf %42, %43 : vector<2x1xf32>
    %cst_23 = arith.constant 4.000000e-01 : f32
    %45 = vector.broadcast %cst_23 : f32 to vector<2x4xf32>
    %46 = arith.mulf %45, %39 : vector<2x4xf32>
    %47 = vector.broadcast %44 : vector<2x1xf32> to vector<2x4xf32>
    %48 = arith.divf %46, %47 : vector<2x4xf32>
    %49 = vector.extract_strided_slice %40 {offsets = [0, 0], sizes = [1, 4], strides = [1, 1]} : vector<4x4xf32> to vector<1x4xf32>
    %50 = vector.shape_cast %49 : vector<1x4xf32> to vector<1x4xf32>
    %51 = vector.broadcast %50 : vector<1x4xf32> to vector<2x4xf32>
    %52 = vector.extract_strided_slice %40 {offsets = [1, 0], sizes = [1, 4], strides = [1, 1]} : vector<4x4xf32> to vector<1x4xf32>
    %53 = vector.shape_cast %52 : vector<1x4xf32> to vector<1x4xf32>
    %54 = vector.broadcast %53 : vector<1x4xf32> to vector<2x4xf32>
    %55 = vector.extract_strided_slice %40 {offsets = [2, 0], sizes = [1, 4], strides = [1, 1]} : vector<4x4xf32> to vector<1x4xf32>
    %56 = vector.shape_cast %55 : vector<1x4xf32> to vector<1x4xf32>
    %57 = vector.broadcast %56 : vector<1x4xf32> to vector<2x4xf32>
    %58 = vector.extract_strided_slice %40 {offsets = [3, 0], sizes = [1, 4], strides = [1, 1]} : vector<4x4xf32> to vector<1x4xf32>
    %59 = vector.shape_cast %58 : vector<1x4xf32> to vector<1x4xf32>
    %60 = vector.broadcast %59 : vector<1x4xf32> to vector<2x4xf32>
    %cst_24 = arith.constant 0.000000e+00 : f32
    %61 = vector.broadcast %cst_24 : f32 to vector<2x4xf32>
    %c0_i32 = arith.constant 0 : i32
    %c125_i32 = arith.constant 125 : i32
    %62 = arith.addi %c0_i32, %c125_i32 : i32
    %c1_i32 = arith.constant 1 : i32
    %63 = scf.for %arg8 = %c0_i32 to %62 step %c1_i32 iter_args(%arg9 = %61) -> (vector<2x4xf32>)  : i32 {
      %74 = math.exp %arg9 : vector<2x4xf32>
      %75 = vector.extract_strided_slice %74 {offsets = [0, 0], sizes = [2, 1], strides = [1, 1]} : vector<2x4xf32> to vector<2x1xf32>
      %76 = vector.broadcast %75 : vector<2x1xf32> to vector<2x4xf32>
      %77 = arith.mulf %76, %51 : vector<2x4xf32>
      %78 = vector.extract_strided_slice %74 {offsets = [0, 1], sizes = [2, 1], strides = [1, 1]} : vector<2x4xf32> to vector<2x1xf32>
      %79 = vector.broadcast %78 : vector<2x1xf32> to vector<2x4xf32>
      %80 = arith.mulf %79, %54 : vector<2x4xf32>
      %81 = arith.addf %77, %80 : vector<2x4xf32>
      %82 = vector.extract_strided_slice %74 {offsets = [0, 2], sizes = [2, 1], strides = [1, 1]} : vector<2x4xf32> to vector<2x1xf32>
      %83 = vector.broadcast %82 : vector<2x1xf32> to vector<2x4xf32>
      %84 = arith.mulf %83, %57 : vector<2x4xf32>
      %85 = arith.addf %81, %84 : vector<2x4xf32>
      %86 = vector.extract_strided_slice %74 {offsets = [0, 3], sizes = [2, 1], strides = [1, 1]} : vector<2x4xf32> to vector<2x1xf32>
      %87 = vector.broadcast %86 : vector<2x1xf32> to vector<2x4xf32>
      %88 = arith.mulf %87, %60 : vector<2x4xf32>
      %89 = arith.addf %85, %88 : vector<2x4xf32>
      %90 = arith.mulf %74, %89 : vector<2x4xf32>
      %cst_29 = arith.constant dense<0.000000e+00> : vector<2xf32>
      %91 = vector.multi_reduction <add>, %90, %cst_29 [1] : vector<2x4xf32> to vector<2xf32>
      %92 = vector.shape_cast %91 : vector<2xf32> to vector<2x1xf32>
      %93 = arith.addf %arg9, %48 : vector<2x4xf32>
      %94 = arith.mulf %74, %89 : vector<2x4xf32>
      %95 = tpu.reciprocal %92 {approx = true} : vector<2x1xf32> -> vector<2x1xf32>
      %cst_30 = arith.constant 4.000000e-01 : f32
      %96 = vector.broadcast %cst_30 : f32 to vector<2x1xf32>
      %97 = arith.mulf %96, %95 : vector<2x1xf32>
      %98 = vector.broadcast %97 : vector<2x1xf32> to vector<2x4xf32>
      %99 = arith.mulf %94, %98 : vector<2x4xf32>
      %100 = arith.subf %93, %99 : vector<2x4xf32>
      %101 = math.exp %100 : vector<2x4xf32>
      %102 = vector.extract_strided_slice %101 {offsets = [0, 0], sizes = [2, 1], strides = [1, 1]} : vector<2x4xf32> to vector<2x1xf32>
      %103 = vector.broadcast %102 : vector<2x1xf32> to vector<2x4xf32>
      %104 = arith.mulf %103, %51 : vector<2x4xf32>
      %105 = vector.extract_strided_slice %101 {offsets = [0, 1], sizes = [2, 1], strides = [1, 1]} : vector<2x4xf32> to vector<2x1xf32>
      %106 = vector.broadcast %105 : vector<2x1xf32> to vector<2x4xf32>
      %107 = arith.mulf %106, %54 : vector<2x4xf32>
      %108 = arith.addf %104, %107 : vector<2x4xf32>
      %109 = vector.extract_strided_slice %101 {offsets = [0, 2], sizes = [2, 1], strides = [1, 1]} : vector<2x4xf32> to vector<2x1xf32>
      %110 = vector.broadcast %109 : vector<2x1xf32> to vector<2x4xf32>
      %111 = arith.mulf %110, %57 : vector<2x4xf32>
      %112 = arith.addf %108, %111 : vector<2x4xf32>
      %113 = vector.extract_strided_slice %101 {offsets = [0, 3], sizes = [2, 1], strides = [1, 1]} : vector<2x4xf32> to vector<2x1xf32>
      %114 = vector.broadcast %113 : vector<2x1xf32> to vector<2x4xf32>
      %115 = arith.mulf %114, %60 : vector<2x4xf32>
      %116 = arith.addf %112, %115 : vector<2x4xf32>
      %117 = arith.mulf %101, %116 : vector<2x4xf32>
      %cst_31 = arith.constant dense<0.000000e+00> : vector<2xf32>
      %118 = vector.multi_reduction <add>, %117, %cst_31 [1] : vector<2x4xf32> to vector<2xf32>
      %119 = vector.shape_cast %118 : vector<2xf32> to vector<2x1xf32>
      %120 = arith.addf %100, %48 : vector<2x4xf32>
      %121 = arith.mulf %101, %116 : vector<2x4xf32>
      %122 = tpu.reciprocal %119 {approx = true} : vector<2x1xf32> -> vector<2x1xf32>
      %cst_32 = arith.constant 4.000000e-01 : f32
      %123 = vector.broadcast %cst_32 : f32 to vector<2x1xf32>
      %124 = arith.mulf %123, %122 : vector<2x1xf32>
      %125 = vector.broadcast %124 : vector<2x1xf32> to vector<2x4xf32>
      %126 = arith.mulf %121, %125 : vector<2x4xf32>
      %127 = arith.subf %120, %126 : vector<2x4xf32>
      %128 = math.exp %127 : vector<2x4xf32>
      %129 = vector.extract_strided_slice %128 {offsets = [0, 0], sizes = [2, 1], strides = [1, 1]} : vector<2x4xf32> to vector<2x1xf32>
      %130 = vector.broadcast %129 : vector<2x1xf32> to vector<2x4xf32>
      %131 = arith.mulf %130, %51 : vector<2x4xf32>
      %132 = vector.extract_strided_slice %128 {offsets = [0, 1], sizes = [2, 1], strides = [1, 1]} : vector<2x4xf32> to vector<2x1xf32>
      %133 = vector.broadcast %132 : vector<2x1xf32> to vector<2x4xf32>
      %134 = arith.mulf %133, %54 : vector<2x4xf32>
      %135 = arith.addf %131, %134 : vector<2x4xf32>
      %136 = vector.extract_strided_slice %128 {offsets = [0, 2], sizes = [2, 1], strides = [1, 1]} : vector<2x4xf32> to vector<2x1xf32>
      %137 = vector.broadcast %136 : vector<2x1xf32> to vector<2x4xf32>
      %138 = arith.mulf %137, %57 : vector<2x4xf32>
      %139 = arith.addf %135, %138 : vector<2x4xf32>
      %140 = vector.extract_strided_slice %128 {offsets = [0, 3], sizes = [2, 1], strides = [1, 1]} : vector<2x4xf32> to vector<2x1xf32>
      %141 = vector.broadcast %140 : vector<2x1xf32> to vector<2x4xf32>
      %142 = arith.mulf %141, %60 : vector<2x4xf32>
      %143 = arith.addf %139, %142 : vector<2x4xf32>
      %144 = arith.mulf %128, %143 : vector<2x4xf32>
      %cst_33 = arith.constant dense<0.000000e+00> : vector<2xf32>
      %145 = vector.multi_reduction <add>, %144, %cst_33 [1] : vector<2x4xf32> to vector<2xf32>
      %146 = vector.shape_cast %145 : vector<2xf32> to vector<2x1xf32>
      %147 = arith.addf %127, %48 : vector<2x4xf32>
      %148 = arith.mulf %128, %143 : vector<2x4xf32>
      %149 = tpu.reciprocal %146 {approx = true} : vector<2x1xf32> -> vector<2x1xf32>
      %cst_34 = arith.constant 4.000000e-01 : f32
      %150 = vector.broadcast %cst_34 : f32 to vector<2x1xf32>
      %151 = arith.mulf %150, %149 : vector<2x1xf32>
      %152 = vector.broadcast %151 : vector<2x1xf32> to vector<2x4xf32>
      %153 = arith.mulf %148, %152 : vector<2x4xf32>
      %154 = arith.subf %147, %153 : vector<2x4xf32>
      %155 = math.exp %154 : vector<2x4xf32>
      %156 = vector.extract_strided_slice %155 {offsets = [0, 0], sizes = [2, 1], strides = [1, 1]} : vector<2x4xf32> to vector<2x1xf32>
      %157 = vector.broadcast %156 : vector<2x1xf32> to vector<2x4xf32>
      %158 = arith.mulf %157, %51 : vector<2x4xf32>
      %159 = vector.extract_strided_slice %155 {offsets = [0, 1], sizes = [2, 1], strides = [1, 1]} : vector<2x4xf32> to vector<2x1xf32>
      %160 = vector.broadcast %159 : vector<2x1xf32> to vector<2x4xf32>
      %161 = arith.mulf %160, %54 : vector<2x4xf32>
      %162 = arith.addf %158, %161 : vector<2x4xf32>
      %163 = vector.extract_strided_slice %155 {offsets = [0, 2], sizes = [2, 1], strides = [1, 1]} : vector<2x4xf32> to vector<2x1xf32>
      %164 = vector.broadcast %163 : vector<2x1xf32> to vector<2x4xf32>
      %165 = arith.mulf %164, %57 : vector<2x4xf32>
      %166 = arith.addf %162, %165 : vector<2x4xf32>
      %167 = vector.extract_strided_slice %155 {offsets = [0, 3], sizes = [2, 1], strides = [1, 1]} : vector<2x4xf32> to vector<2x1xf32>
      %168 = vector.broadcast %167 : vector<2x1xf32> to vector<2x4xf32>
      %169 = arith.mulf %168, %60 : vector<2x4xf32>
      %170 = arith.addf %166, %169 : vector<2x4xf32>
      %171 = arith.mulf %155, %170 : vector<2x4xf32>
      %cst_35 = arith.constant dense<0.000000e+00> : vector<2xf32>
      %172 = vector.multi_reduction <add>, %171, %cst_35 [1] : vector<2x4xf32> to vector<2xf32>
      %173 = vector.shape_cast %172 : vector<2xf32> to vector<2x1xf32>
      %174 = arith.addf %154, %48 : vector<2x4xf32>
      %175 = arith.mulf %155, %170 : vector<2x4xf32>
      %176 = tpu.reciprocal %173 {approx = true} : vector<2x1xf32> -> vector<2x1xf32>
      %cst_36 = arith.constant 4.000000e-01 : f32
      %177 = vector.broadcast %cst_36 : f32 to vector<2x1xf32>
      %178 = arith.mulf %177, %176 : vector<2x1xf32>
      %179 = vector.broadcast %178 : vector<2x1xf32> to vector<2x4xf32>
      %180 = arith.mulf %175, %179 : vector<2x4xf32>
      %181 = arith.subf %174, %180 : vector<2x4xf32>
      %182 = math.exp %181 : vector<2x4xf32>
      %183 = vector.extract_strided_slice %182 {offsets = [0, 0], sizes = [2, 1], strides = [1, 1]} : vector<2x4xf32> to vector<2x1xf32>
      %184 = vector.broadcast %183 : vector<2x1xf32> to vector<2x4xf32>
      %185 = arith.mulf %184, %51 : vector<2x4xf32>
      %186 = vector.extract_strided_slice %182 {offsets = [0, 1], sizes = [2, 1], strides = [1, 1]} : vector<2x4xf32> to vector<2x1xf32>
      %187 = vector.broadcast %186 : vector<2x1xf32> to vector<2x4xf32>
      %188 = arith.mulf %187, %54 : vector<2x4xf32>
      %189 = arith.addf %185, %188 : vector<2x4xf32>
      %190 = vector.extract_strided_slice %182 {offsets = [0, 2], sizes = [2, 1], strides = [1, 1]} : vector<2x4xf32> to vector<2x1xf32>
      %191 = vector.broadcast %190 : vector<2x1xf32> to vector<2x4xf32>
      %192 = arith.mulf %191, %57 : vector<2x4xf32>
      %193 = arith.addf %189, %192 : vector<2x4xf32>
      %194 = vector.extract_strided_slice %182 {offsets = [0, 3], sizes = [2, 1], strides = [1, 1]} : vector<2x4xf32> to vector<2x1xf32>
      %195 = vector.broadcast %194 : vector<2x1xf32> to vector<2x4xf32>
      %196 = arith.mulf %195, %60 : vector<2x4xf32>
      %197 = arith.addf %193, %196 : vector<2x4xf32>
      %198 = arith.mulf %182, %197 : vector<2x4xf32>
      %cst_37 = arith.constant dense<0.000000e+00> : vector<2xf32>
      %199 = vector.multi_reduction <add>, %198, %cst_37 [1] : vector<2x4xf32> to vector<2xf32>
      %200 = vector.shape_cast %199 : vector<2xf32> to vector<2x1xf32>
      %201 = arith.addf %181, %48 : vector<2x4xf32>
      %202 = arith.mulf %182, %197 : vector<2x4xf32>
      %203 = tpu.reciprocal %200 {approx = true} : vector<2x1xf32> -> vector<2x1xf32>
      %cst_38 = arith.constant 4.000000e-01 : f32
      %204 = vector.broadcast %cst_38 : f32 to vector<2x1xf32>
      %205 = arith.mulf %204, %203 : vector<2x1xf32>
      %206 = vector.broadcast %205 : vector<2x1xf32> to vector<2x4xf32>
      %207 = arith.mulf %202, %206 : vector<2x4xf32>
      %208 = arith.subf %201, %207 : vector<2x4xf32>
      %209 = math.exp %208 : vector<2x4xf32>
      %210 = vector.extract_strided_slice %209 {offsets = [0, 0], sizes = [2, 1], strides = [1, 1]} : vector<2x4xf32> to vector<2x1xf32>
      %211 = vector.broadcast %210 : vector<2x1xf32> to vector<2x4xf32>
      %212 = arith.mulf %211, %51 : vector<2x4xf32>
      %213 = vector.extract_strided_slice %209 {offsets = [0, 1], sizes = [2, 1], strides = [1, 1]} : vector<2x4xf32> to vector<2x1xf32>
      %214 = vector.broadcast %213 : vector<2x1xf32> to vector<2x4xf32>
      %215 = arith.mulf %214, %54 : vector<2x4xf32>
      %216 = arith.addf %212, %215 : vector<2x4xf32>
      %217 = vector.extract_strided_slice %209 {offsets = [0, 2], sizes = [2, 1], strides = [1, 1]} : vector<2x4xf32> to vector<2x1xf32>
      %218 = vector.broadcast %217 : vector<2x1xf32> to vector<2x4xf32>
      %219 = arith.mulf %218, %57 : vector<2x4xf32>
      %220 = arith.addf %216, %219 : vector<2x4xf32>
      %221 = vector.extract_strided_slice %209 {offsets = [0, 3], sizes = [2, 1], strides = [1, 1]} : vector<2x4xf32> to vector<2x1xf32>
      %222 = vector.broadcast %221 : vector<2x1xf32> to vector<2x4xf32>
      %223 = arith.mulf %222, %60 : vector<2x4xf32>
      %224 = arith.addf %220, %223 : vector<2x4xf32>
      %225 = arith.mulf %209, %224 : vector<2x4xf32>
      %cst_39 = arith.constant dense<0.000000e+00> : vector<2xf32>
      %226 = vector.multi_reduction <add>, %225, %cst_39 [1] : vector<2x4xf32> to vector<2xf32>
      %227 = vector.shape_cast %226 : vector<2xf32> to vector<2x1xf32>
      %228 = arith.addf %208, %48 : vector<2x4xf32>
      %229 = arith.mulf %209, %224 : vector<2x4xf32>
      %230 = tpu.reciprocal %227 {approx = true} : vector<2x1xf32> -> vector<2x1xf32>
      %cst_40 = arith.constant 4.000000e-01 : f32
      %231 = vector.broadcast %cst_40 : f32 to vector<2x1xf32>
      %232 = arith.mulf %231, %230 : vector<2x1xf32>
      %233 = vector.broadcast %232 : vector<2x1xf32> to vector<2x4xf32>
      %234 = arith.mulf %229, %233 : vector<2x4xf32>
      %235 = arith.subf %228, %234 : vector<2x4xf32>
      %236 = math.exp %235 : vector<2x4xf32>
      %237 = vector.extract_strided_slice %236 {offsets = [0, 0], sizes = [2, 1], strides = [1, 1]} : vector<2x4xf32> to vector<2x1xf32>
      %238 = vector.broadcast %237 : vector<2x1xf32> to vector<2x4xf32>
      %239 = arith.mulf %238, %51 : vector<2x4xf32>
      %240 = vector.extract_strided_slice %236 {offsets = [0, 1], sizes = [2, 1], strides = [1, 1]} : vector<2x4xf32> to vector<2x1xf32>
      %241 = vector.broadcast %240 : vector<2x1xf32> to vector<2x4xf32>
      %242 = arith.mulf %241, %54 : vector<2x4xf32>
      %243 = arith.addf %239, %242 : vector<2x4xf32>
      %244 = vector.extract_strided_slice %236 {offsets = [0, 2], sizes = [2, 1], strides = [1, 1]} : vector<2x4xf32> to vector<2x1xf32>
      %245 = vector.broadcast %244 : vector<2x1xf32> to vector<2x4xf32>
      %246 = arith.mulf %245, %57 : vector<2x4xf32>
      %247 = arith.addf %243, %246 : vector<2x4xf32>
      %248 = vector.extract_strided_slice %236 {offsets = [0, 3], sizes = [2, 1], strides = [1, 1]} : vector<2x4xf32> to vector<2x1xf32>
      %249 = vector.broadcast %248 : vector<2x1xf32> to vector<2x4xf32>
      %250 = arith.mulf %249, %60 : vector<2x4xf32>
      %251 = arith.addf %247, %250 : vector<2x4xf32>
      %252 = arith.mulf %236, %251 : vector<2x4xf32>
      %cst_41 = arith.constant dense<0.000000e+00> : vector<2xf32>
      %253 = vector.multi_reduction <add>, %252, %cst_41 [1] : vector<2x4xf32> to vector<2xf32>
      %254 = vector.shape_cast %253 : vector<2xf32> to vector<2x1xf32>
      %255 = arith.addf %235, %48 : vector<2x4xf32>
      %256 = arith.mulf %236, %251 : vector<2x4xf32>
      %257 = tpu.reciprocal %254 {approx = true} : vector<2x1xf32> -> vector<2x1xf32>
      %cst_42 = arith.constant 4.000000e-01 : f32
      %258 = vector.broadcast %cst_42 : f32 to vector<2x1xf32>
      %259 = arith.mulf %258, %257 : vector<2x1xf32>
      %260 = vector.broadcast %259 : vector<2x1xf32> to vector<2x4xf32>
      %261 = arith.mulf %256, %260 : vector<2x4xf32>
      %262 = arith.subf %255, %261 : vector<2x4xf32>
      %263 = math.exp %262 : vector<2x4xf32>
      %264 = vector.extract_strided_slice %263 {offsets = [0, 0], sizes = [2, 1], strides = [1, 1]} : vector<2x4xf32> to vector<2x1xf32>
      %265 = vector.broadcast %264 : vector<2x1xf32> to vector<2x4xf32>
      %266 = arith.mulf %265, %51 : vector<2x4xf32>
      %267 = vector.extract_strided_slice %263 {offsets = [0, 1], sizes = [2, 1], strides = [1, 1]} : vector<2x4xf32> to vector<2x1xf32>
      %268 = vector.broadcast %267 : vector<2x1xf32> to vector<2x4xf32>
      %269 = arith.mulf %268, %54 : vector<2x4xf32>
      %270 = arith.addf %266, %269 : vector<2x4xf32>
      %271 = vector.extract_strided_slice %263 {offsets = [0, 2], sizes = [2, 1], strides = [1, 1]} : vector<2x4xf32> to vector<2x1xf32>
      %272 = vector.broadcast %271 : vector<2x1xf32> to vector<2x4xf32>
      %273 = arith.mulf %272, %57 : vector<2x4xf32>
      %274 = arith.addf %270, %273 : vector<2x4xf32>
      %275 = vector.extract_strided_slice %263 {offsets = [0, 3], sizes = [2, 1], strides = [1, 1]} : vector<2x4xf32> to vector<2x1xf32>
      %276 = vector.broadcast %275 : vector<2x1xf32> to vector<2x4xf32>
      %277 = arith.mulf %276, %60 : vector<2x4xf32>
      %278 = arith.addf %274, %277 : vector<2x4xf32>
      %279 = arith.mulf %263, %278 : vector<2x4xf32>
      %cst_43 = arith.constant dense<0.000000e+00> : vector<2xf32>
      %280 = vector.multi_reduction <add>, %279, %cst_43 [1] : vector<2x4xf32> to vector<2xf32>
      %281 = vector.shape_cast %280 : vector<2xf32> to vector<2x1xf32>
      %282 = arith.addf %262, %48 : vector<2x4xf32>
      %283 = arith.mulf %263, %278 : vector<2x4xf32>
      %284 = tpu.reciprocal %281 {approx = true} : vector<2x1xf32> -> vector<2x1xf32>
      %cst_44 = arith.constant 4.000000e-01 : f32
      %285 = vector.broadcast %cst_44 : f32 to vector<2x1xf32>
      %286 = arith.mulf %285, %284 : vector<2x1xf32>
      %287 = vector.broadcast %286 : vector<2x1xf32> to vector<2x4xf32>
      %288 = arith.mulf %283, %287 : vector<2x4xf32>
      %289 = arith.subf %282, %288 : vector<2x4xf32>
      %cst_45 = arith.constant dense<0xFF800000> : vector<2xf32>
      %290 = vector.multi_reduction <maximumf>, %289, %cst_45 [1] : vector<2x4xf32> to vector<2xf32>
      %291 = vector.shape_cast %290 : vector<2xf32> to vector<2x1xf32>
      %292 = vector.broadcast %291 : vector<2x1xf32> to vector<2x4xf32>
      %293 = arith.subf %289, %292 : vector<2x4xf32>
      scf.yield %293 : vector<2x4xf32>
    }
    %cst_25 = arith.constant dense<0xFF800000> : vector<2xf32>
    %64 = vector.multi_reduction <maximumf>, %63, %cst_25 [1] : vector<2x4xf32> to vector<2xf32>
    %65 = vector.shape_cast %64 : vector<2xf32> to vector<2x1xf32>
    %66 = vector.broadcast %65 : vector<2x1xf32> to vector<2x4xf32>
    %67 = arith.subf %63, %66 : vector<2x4xf32>
    %68 = math.exp %67 : vector<2x4xf32>
    %cst_26 = arith.constant dense<0.000000e+00> : vector<2xf32>
    %69 = vector.multi_reduction <add>, %68, %cst_26 [1] : vector<2x4xf32> to vector<2xf32>
    %70 = vector.shape_cast %69 : vector<2xf32> to vector<2x1xf32>
    %71 = vector.broadcast %70 : vector<2x1xf32> to vector<2x4xf32>
    %72 = arith.divf %68, %71 : vector<2x4xf32>
    %c0_27 = arith.constant 0 : index
    %c0_28 = arith.constant 0 : index
    %73 = vector.load %arg7[%c0_27, %c0_28] : memref<2x4xf32, #tpu.memory_space<vmem>>, vector<2x4xf32>
    tpu.vector_store %arg7[%c0_27, %c0_28], %72 {strides = array<i32>} : memref<2x4xf32, #tpu.memory_space<vmem>>, vector<2x4xf32>,
    return
  }
  func.func @transform_0(%arg0: i32) -> (i32, i32) {
    %c0_i32 = arith.constant 0 : i32
    %c0_i32_0 = arith.constant 0 : i32
    %c0_i32_1 = arith.constant 0 : i32
    return %c0_i32, %c0_i32_0 : i32, i32
  }
  func.func @transform_1(%arg0: i32) -> (i32, i32) {
    %c0_i32 = arith.constant 0 : i32
    %c0_i32_0 = arith.constant 0 : i32
    %c0_i32_1 = arith.constant 0 : i32
    return %c0_i32, %c0_i32_0 : i32, i32
  }
  func.func @transform_2(%arg0: i32) -> (i32, i32) {
    %c0_i32 = arith.constant 0 : i32
    %c0_i32_0 = arith.constant 0 : i32
    %c0_i32_1 = arith.constant 0 : i32
    return %c0_i32, %c0_i32_0 : i32, i32
  }
  func.func @transform_3(%arg0: i32) -> (i32, i32) {
    %c0_i32 = arith.constant 0 : i32
    %c0_i32_0 = arith.constant 0 : i32
    %c0_i32_1 = arith.constant 0 : i32
    return %c0_i32, %c0_i32_0 : i32, i32
  }
  func.func @transform_4(%arg0: i32) -> (i32, i32) {
    %c0_i32 = arith.constant 0 : i32
    %c0_i32_0 = arith.constant 0 : i32
    %c0_i32_1 = arith.constant 0 : i32
    return %c0_i32, %c0_i32_0 : i32, i32
  }
  func.func @transform_5(%arg0: i32) -> (i32, i32) {
    %c0_i32 = arith.constant 0 : i32
    %c0_i32_0 = arith.constant 0 : i32
    %c0_i32_1 = arith.constant 0 : i32
    return %c0_i32, %c0_i32_0 : i32, i32
  }
  func.func @transform_6(%arg0: i32) -> (i32, i32) {
    %c0_i32 = arith.constant 0 : i32
    %c0_i32_0 = arith.constant 0 : i32
    %c0_i32_1 = arith.constant 0 : i32
    return %c0_i32, %c0_i32_0 : i32, i32
  }
}

</mosaic_0001>

<bundles_post_ra>
// kernel: tpu_custom_call.1
= control target key start
LH: loop header
LB: loop body
LE: loop exit
PB: predicated region body
PF: predicated region fallthrough
CT: control target
= control target key end

     0   :  { %11 = vsyncpa [#allocation3], 0  ;;  %s976_s0 = inlined_call_operand.hbm [shape: f32[2,32], index: 0, kind: input, shape index: {}]   ;;  %s977_s1 = inlined_call_operand.vmem [shape: f32[32,32], index: 1, kind: input, shape index: {}]   ;;  %s978_s2 = inlined_call_operand.vmem [shape: f32[1,32], index: 2, kind: input, shape index: {}]   ;;  %s979_s3 = inlined_call_operand.vmem [shape: f32[32,4], index: 3, kind: input, shape index: {}]   ;;  %s980_s4 = inlined_call_operand.vmem [shape: f32[1,4], index: 4, kind: input, shape index: {}]   ;;  %s981_s5 = inlined_call_operand.vmem [shape: f32[4,4], index: 5, kind: input, shape index: {}]   ;;  %s982_s6 = inlined_call_operand.hbm [shape: f32[2,4], index: 6, kind: output, shape index: {}]  }
   0x1   :  { %12 = vsyncpa [#allocation4], 0  ;;  %s780_s21 = smov [#allocation2]  }
   0x2   :  { %s19_s22 = sshll.u32 %s780_s21, 4  ;;  %s20_s22 = int_to_ptr.vmem [resolvable:$true] %s19_s22 }
   0x3   :  { %s728_s23 = scalar_lea.vmem %s20_s22, 32  ;;  %p733_p1 = scmp.lt.s32.totalorder %s20_s22, %s20_s22 }
   0x4   :  { %p729_p0 = scmp.ne.s32.totalorder %s20_s22, %s728_s23  ;;  %p734_p2 = scmp.lt.s32.totalorder %s728_s23, %s728_s23 }
   0x6   :  { %p735_p3 = por %p734_p2, %p733_p1 }
   0x8   :  { %p736_p4 = pnand %p735_p3, %p729_p0 }
   0xa   :  { %739 = shalt.err (!%p736_p4)
}
   0xb   :  { %22 = dma.hbm_to_vmem [thread:$0]  %s976_s0, 32, %s20_s22, [#allocation3]  }
   0xc   :  { %768 = dma.done.wait [#allocation3], 32  }
   0xd   :  { %769 = vsyncadd [#allocation3], 4294967264  ;;  %v242_v0 = vlaneseq  ;;  %v781_v1 = vmov 0.0   ;;  %vm782_vm0 = vmmov 0   ;;  %v234_v7 = vld [vmem:[%s981_s5] sm:$0xf] }
   0xe   :  { %598 = vmatprep.subr.mxu0 %v781_v1  ;;  %606 = vmatprep.mubr.msk.f32.mxu0 %vm782_vm0, %v781_v1  ;;  %v40_v8 = vld [vmem:[%s977_s1 + $0x18] sm:$0xff]  ;;  %v39_v9 = vld [vmem:[%s977_s1 + $0x10] sm:$0xff]  ;;  %v38_v14 = vld [vmem:[%s977_s1 + $0x8] sm:$0xff]  ;;  %vm48_vm1 = vcmask 261120   ;;  %vm209_vm3 = vcmask 25600   ;;  %v876_v57 = vmov 0.0  }
   0xf   :  { %v243_v2 = vshrl.u32 %v242_v0, 7  ;;  %609 = vmatprep.subr.mxu1 %v781_v1  ;;  %617 = vmatprep.mubr.msk.f32.mxu1 %vm782_vm0, %v781_v1  ;;  %v128_v15 = vld [vmem:[%s979_s3 + $0x18] sm:$0xff]  ;;  %v37_v16 = vld [vmem:[%s977_s1] sm:$0xff]  ;;  %v127_v18 = vld [vmem:[%s979_s3 + $0x10] sm:$0xff] }
  0x10   :  { %599 = vmatpush3.msra.mxu0 %v40_v8  ;;  %610 = vmatpush3.msra.mxu1 %v128_v15  ;;  %v36_v17 = vld [vmem:[#allocation2] sm:$0x3]  ;;  %v126_v19 = vld [vmem:[%s979_s3 + $0x8] sm:$0xff] }
  0x11   :  { %v244_v3 = vsub.s32 0, %v243_v2  ;;  %v248_v4 = vsub.s32 1, %v243_v2  ;;  %v252_v5 = vsub.s32 2, %v243_v2  ;;  %v256_v6 = vsub.s32 3, %v243_v2  ;;  %600 = vmatprep.subr.mxu0 %v781_v1  ;;  %611 = vmatprep.subr.mxu1 %v781_v1  ;;  %v125_v20 = vld [vmem:[%s979_s3] sm:$0xff] }
  0x12   :  { %601 = vmatpush3.msra.mxu0 %v39_v9  ;;  %612 = vmatpush3.msra.mxu1 %v127_v18  ;;  %v584_v21 = vld [vmem:[%s978_s2] ss:$0 sm:$0xff]  ;;  %s878_s2 = smov 0  }
  0x13   :  { %v835_v10 = vrot.slane %v234_v7, %v244_v3  ;;  %v837_v11 = vrot.slane %v234_v7, %v248_v4  ;;  %v839_v12 = vrot.slane %v234_v7, %v252_v5  ;;  %v841_v13 = vrot.slane %v234_v7, %v256_v6  ;;  %602 = vmatprep.subr.mxu0 %v781_v1  ;;  %v586_v27 = vld [vmem:[%s980_s4] ss:$0 sm:$0xff] }
  0x14   :  { %603 = vmatpush3.msra.mxu0 %v38_v14  ;;  %613 = vmatprep.subr.mxu1 %v781_v1 }
  0x15   :  { %604 = vmatprep.subr.mxu0 %v781_v1  ;;  %614 = vmatpush3.msra.mxu1 %v126_v19 }
  0x16   :  { %605 = vmatpush3.msra.mxu0 %v37_v16  ;;  %615 = vmatprep.subr.mxu1 %v781_v1 }
  0x17   :  { %607 = vmatmul.mubr.msk.f32.vlgmr.msra.gmra.mxu0 %vm48_vm1, %v36_v17  ;;  %616 = vmatpush3.msra.mxu1 %v125_v20 }
  0xd7   :  { %v118_v22 = vpop.f32.mrf.mxu0 }
  0xd8   :  { %v119_v23 = vadd.f32 %v584_v21, %v118_v22 }
  0xd9   :  { %v608_v24 = vpop.f32.mrf.mxu0 }
  0xda   :  { %vm122_vm2 = vcmp.ge.f32.partialorder %v119_v23, 0.0  ;;  %v123_v25 = vmul.f32 -0.1, %v119_v23 }
  0xdc   :  { %v124_v26 = vsel %vm122_vm2, %v119_v23, %v123_v25 }
  0xdd   :  { %618 = vmatmul.mubr.msk.f32.vlgmr.msra.gmra.mxu1 %vm48_vm1, %v124_v26 }
 0x19d   :  { %v205_v28 = vpop.f32.mrf.mxu1 }
 0x19e   :  { %v206_v29 = vadd.f32 %v586_v27, %v205_v28 }
 0x19f   :  { %v619_v30 = vpop.f32.mrf.mxu1 }
 0x1a0   :  { %v210_v31 = vsel %vm209_vm3, %v206_v29, -inf }
 0x1a1   :  { %211 = vmax.xlane.f32.xlu0 %v210_v31 }
 0x22a   :  { %v212_v32 = vpop.xlane.xlu0 %211 }
 0x22b   :  { %v213_v33 = vsub.f32 %v206_v29, %v212_v32 }
 0x22d   :  { %v214_v34 = vmul.f32 1.442695, %v213_v33 }
 0x22f   :  { %644 = vpow2.f32 %v214_v34 }
 0x23c   :  { %v645_v35 = vpop.eup %644 }
 0x23d   :  { %v216_v36 = vsel %vm209_vm3, %v645_v35, 0.0 }
 0x23e   :  { %217 = vadd.xlane.f32.xlu0 %v216_v36 }
 0x2c7   :  { %v218_v37 = vpop.xlane.xlu0 %217 }
 0x2c8   :  { %646 = vrcp.f32 %v218_v37 }
 0x2d5   :  { %v647_v38 = vpop.eup %646 }
 0x2d6   :  { %v220_v39 = vmul.f32 %v647_v38, %v645_v35 }
 0x2d8   :  { %v221_v40 = vmax.f32 %v220_v39, 0.1 }
 0x2da   :  { %v222_v41 = vmin.f32 %v221_v40, 0.6 }
 0x2dc   :  { %v223_v42 = vsel %vm209_vm3, %v222_v41, inf  ;;  %v226_v43 = vsel %vm209_vm3, %v222_v41, -inf }
 0x2dd   :  { %224 = vmin.xlane.f32.xlu1 %v223_v42 }
 0x2e1   :  { %227 = vmax.xlane.f32.xlu1 %v226_v43 }
 0x366   :  { %v225_v44 = vpop.xlane.xlu1 %224 }
 0x367   :  { %v229_v48 = vsub.f32 %v222_v41, %v225_v44 }
 0x36a   :  { %v228_v45 = vpop.xlane.xlu1 %227 }
 0x36b   :  { %v230_v46 = vsub.f32 %v228_v45, %v225_v44 }
 0x36d   :  { %v231_v47 = vmax.f32 %v230_v46, 1e-12 }
 0x36f   :  { %648 = vrcp.f32 %v231_v47 }
 0x37c   :  { %v649_v49 = vpop.eup %648 }
 0x37d   :  { %v233_v50 = vmul.f32 %v649_v49, %v229_v48 }
 0x37f   :  { %v235_v51 = vsel %vm209_vm3, %v233_v50, 0.0  ;;  %v239_v54 = vmul.f32 0.4, %v233_v50 }
 0x380   :  { %236 = vadd.xlane.f32.xlu0 %v235_v51 }
 0x409   :  { %v237_v52 = vpop.xlane.xlu0 %236 }
 0x40a   :  { %v238_v53 = vmax.f32 %v237_v52, 1e-12 }
 0x40c   :  { %650 = vrcp.f32 %v238_v53 }
 0x419   :  { %v651_v55 = vpop.eup %650 }
 0x41a   :  { %v874_v56 = vmul.f32 %v651_v55, %v239_v54 }
 0x41b LB: > { %v783_v58 = vmov 0   ;;  %v784_v59 = vmov 2   ;;  %v265_v60 = vmul.f32 1.442695, %v774_v57  ;;  %v785_v62 = vmov 1   ;;  %s263_s2 = sadd.s32 1, %s778_s2   ;;  %s778_s2 = sphi %s878_s2, %s263_s2   ;;  %v774_v57 = vphi %v876_v57, %v983_v57  }
 0x41c   : > { %652 = vset.pattern.permute.xlu0 %v783_v58  ;;  %654 = vset.pattern.permute.xlu1 %v784_v59  ;;  %v786_v63 = vmov 3   ;;  %v295_v19 = vadd.f32 %v774_v57, %v874_v56  ;;  %p260_p5 = scmp.ge.s32.totalorder %s263_s2, 125  }
 0x41d   : > { %684 = vpow2.f32 %v265_v60  ;;  %s787_s3 = smov (%p260_p5), [#allocation5]  }
 0x41e   :  { %s567_s4 = sshll.u32 (%p260_p5), %s787_s3, 4  ;;  %s568_s4 = int_to_ptr.vmem [resolvable:$true] %s567_s4 }
 0x41f   :  { %s740_s21 = scalar_lea.vmem (%p260_p5), %s568_s4, 32  ;;  %p745_p7 = scmp.lt.s32.totalorder (%p260_p5), %s568_s4, %s568_s4 }
 0x420   :  { %p741_p6 = scmp.ne.s32.totalorder (%p260_p5), %s568_s4, %s740_s21  ;;  %p746_p8 = scmp.lt.s32.totalorder (%p260_p5), %s740_s21, %s740_s21 }
 0x422   :  { %p747_p9 = por (%p260_p5), %p746_p8, %p745_p7 }
 0x424   :  { %p748_p10 = pnand (%p260_p5), %p747_p9, %p741_p6 }
 0x42a   : > { %v685_v61 = vpop.eup %684 }
 0x42b   : > { %269 = vperm.xlu0 %652, %v685_v61   ;;  %280 = vperm.xlu1 %654, %v685_v61  }
 0x42f   : > { %653 = vset.pattern.permute.xlu0 %v785_v62  ;;  %655 = vset.pattern.permute.xlu1 %v786_v63 }
 0x430   : > { %274 = vperm.xlu0 %653, %v685_v61   ;;  %286 = vperm.xlu1 %655, %v685_v61  }
 0x434   : > { %656 = vset.pattern.permute.xlu0 %v783_v58  ;;  %660 = vset.pattern.permute.xlu1 %v783_v58 }
 0x4a6   : > { %v270_v0 = vpop.permute.xlu0 %269  ;;  %v281_v1 = vpop.permute.xlu1 %280 }
 0x4a7   : > { %v272_v4 = vmul.f32 %v270_v0, %v835_v10  ;;  %v283_v6 = vmul.f32 %v281_v1, %v839_v12 }
 0x4ab   : > { %v275_v2 = vpop.permute.xlu0 %274  ;;  %v287_v3 = vpop.permute.xlu1 %286 }
 0x4ac   : > { %v277_v5 = vmul.f32 %v275_v2, %v837_v11  ;;  %v289_v8 = vmul.f32 %v287_v3, %v841_v13 }
 0x4ae   : > { %v278_v7 = vadd.f32 %v277_v5, %v272_v4 }
 0x4b0   : > { %v284_v9 = vadd.f32 %v283_v6, %v278_v7 }
 0x4b2   : > { %v290_v14 = vadd.f32 %v289_v8, %v284_v9 }
 0x4b4   : > { %v291_v15 = vmul.f32 %v685_v61, %v290_v14 }
 0x4b6   : > { %v292_v16 = vsel %vm209_vm3, %v291_v15, 0.0 }
 0x4b7   : > { %293 = vadd.xlane.f32.xlu1 %v292_v16 }
 0x540   : > { %v294_v17 = vpop.xlane.xlu1 %293 }
 0x541   : > { %686 = vrcp.f32 %v294_v17 }
 0x54e   : > { %v687_v18 = vpop.eup %686 }
 0x54f   : > { %v297_v20 = vmul.f32 0.4, %v687_v18 }
 0x551   : > { %v298_v21 = vmul.f32 %v297_v20, %v291_v15 }
 0x553   : > { %v299_v22 = vsub.f32 %v295_v19, %v298_v21 }
 0x555   : > { %v300_v23 = vmul.f32 1.442695, %v299_v22  ;;  %v330_v41 = vadd.f32 %v299_v22, %v874_v56 }
 0x557   : > { %688 = vpow2.f32 %v300_v23 }
 0x564   : > { %v689_v24 = vpop.eup %688 }
 0x565   : > { %304 = vperm.xlu0 %656, %v689_v24  }
 0x569   : > { %657 = vset.pattern.permute.xlu0 %v785_v62 }
 0x56a   : > { %309 = vperm.xlu0 %657, %v689_v24  }
 0x56e   : > { %658 = vset.pattern.permute.xlu0 %v784_v59 }
 0x56f   : > { %315 = vperm.xlu0 %658, %v689_v24  }
 0x573   : > { %659 = vset.pattern.permute.xlu0 %v786_v63 }
 0x574   : > { %321 = vperm.xlu0 %659, %v689_v24  }
 0x578   : > { %664 = vset.pattern.permute.xlu0 %v783_v58 }
 0x5e0   : > { %v305_v25 = vpop.permute.xlu0 %304 }
 0x5e1   : > { %v307_v29 = vmul.f32 %v305_v25, %v835_v10 }
 0x5e5   : > { %v310_v26 = vpop.permute.xlu0 %309 }
 0x5e6   : > { %v312_v27 = vmul.f32 %v310_v26, %v837_v11 }
 0x5e8   : > { %v313_v31 = vadd.f32 %v312_v27, %v307_v29 }
 0x5ea   : > { %v316_v28 = vpop.permute.xlu0 %315 }
 0x5eb   : > { %v318_v30 = vmul.f32 %v316_v28, %v839_v12 }
 0x5ed   : > { %v319_v33 = vadd.f32 %v318_v30, %v313_v31 }
 0x5ef   : > { %v322_v32 = vpop.permute.xlu0 %321 }
 0x5f0   : > { %v324_v34 = vmul.f32 %v322_v32, %v841_v13 }
 0x5f2   : > { %v325_v35 = vadd.f32 %v324_v34, %v319_v33 }
 0x5f4   : > { %v326_v36 = vmul.f32 %v689_v24, %v325_v35 }
 0x5f6   : > { %v327_v37 = vsel %vm209_vm3, %v326_v36, 0.0 }
 0x5f7   : > { %328 = vadd.xlane.f32.xlu0 %v327_v37 }
 0x680   : > { %v329_v38 = vpop.xlane.xlu0 %328 }
 0x681   : > { %690 = vrcp.f32 %v329_v38 }
 0x68e   : > { %v691_v39 = vpop.eup %690 }
 0x68f   : > { %v332_v40 = vmul.f32 0.4, %v691_v39 }
 0x691   : > { %v333_v42 = vmul.f32 %v332_v40, %v326_v36 }
 0x693   : > { %v334_v43 = vsub.f32 %v330_v41, %v333_v42 }
 0x695   : > { %v335_v44 = vmul.f32 1.442695, %v334_v43  ;;  %v365_v3 = vadd.f32 %v334_v43, %v874_v56 }
 0x697   : > { %692 = vpow2.f32 %v335_v44 }
 0x6a4   : > { %v693_v45 = vpop.eup %692 }
 0x6a5   : > { %339 = vperm.xlu1 %660, %v693_v45  }
 0x6a9   : > { %661 = vset.pattern.permute.xlu1 %v785_v62 }
 0x6aa   : > { %344 = vperm.xlu1 %661, %v693_v45  }
 0x6ae   : > { %662 = vset.pattern.permute.xlu1 %v784_v59 }
 0x6af   : > { %350 = vperm.xlu1 %662, %v693_v45  }
 0x6b3   : > { %663 = vset.pattern.permute.xlu1 %v786_v63 }
 0x6b4   : > { %356 = vperm.xlu1 %663, %v693_v45  }
 0x6b8   : > { %665 = vset.pattern.permute.xlu1 %v785_v62 }
 0x720   : > { %v340_v46 = vpop.permute.xlu1 %339 }
 0x721   : > { %v342_v50 = vmul.f32 %v340_v46, %v835_v10 }
 0x725   : > { %v345_v47 = vpop.permute.xlu1 %344 }
 0x726   : > { %v347_v48 = vmul.f32 %v345_v47, %v837_v11 }
 0x728   : > { %v348_v52 = vadd.f32 %v347_v48, %v342_v50 }
 0x72a   : > { %v351_v49 = vpop.permute.xlu1 %350 }
 0x72b   : > { %v353_v51 = vmul.f32 %v351_v49, %v839_v12 }
 0x72d   : > { %v354_v54 = vadd.f32 %v353_v51, %v348_v52 }
 0x72f   : > { %v357_v53 = vpop.permute.xlu1 %356 }
 0x730   : > { %v359_v55 = vmul.f32 %v357_v53, %v841_v13 }
 0x732   : > { %v360_v57 = vadd.f32 %v359_v55, %v354_v54 }
 0x734   : > { %v361_v60 = vmul.f32 %v693_v45, %v360_v57 }
 0x736   : > { %v362_v61 = vsel %vm209_vm3, %v361_v60, 0.0 }
 0x737   : > { %363 = vadd.xlane.f32.xlu1 %v362_v61 }
 0x7c0   : > { %v364_v0 = vpop.xlane.xlu1 %363 }
 0x7c1   : > { %694 = vrcp.f32 %v364_v0 }
 0x7ce   : > { %v695_v1 = vpop.eup %694 }
 0x7cf   : > { %v367_v2 = vmul.f32 0.4, %v695_v1 }
 0x7d1   : > { %v368_v4 = vmul.f32 %v367_v2, %v361_v60 }
 0x7d3   : > { %v369_v5 = vsub.f32 %v365_v3, %v368_v4 }
 0x7d5   : > { %v370_v6 = vmul.f32 1.442695, %v369_v5  ;;  %v400_v28 = vadd.f32 %v369_v5, %v874_v56 }
 0x7d7   : > { %696 = vpow2.f32 %v370_v6 }
 0x7e4   : > { %v697_v7 = vpop.eup %696 }
 0x7e5   : > { %379 = vperm.xlu1 %665, %v697_v7   ;;  %374 = vperm.xlu0 %664, %v697_v7  }
 0x7e9   : > { %667 = vset.pattern.permute.xlu1 %v786_v63  ;;  %666 = vset.pattern.permute.xlu0 %v784_v59 }
 0x7ea   : > { %391 = vperm.xlu1 %667, %v697_v7   ;;  %385 = vperm.xlu0 %666, %v697_v7  }
 0x7ee   : > { %668 = vset.pattern.permute.xlu1 %v783_v58  ;;  %672 = vset.pattern.permute.xlu0 %v783_v58 }
 0x860   : > { %v380_v8 = vpop.permute.xlu1 %379  ;;  %v375_v9 = vpop.permute.xlu0 %374 }
 0x861   : > { %v382_v14 = vmul.f32 %v380_v8, %v837_v11  ;;  %v377_v15 = vmul.f32 %v375_v9, %v835_v10 }
 0x863   : > { %v383_v18 = vadd.f32 %v382_v14, %v377_v15 }
 0x865   : > { %v392_v16 = vpop.permute.xlu1 %391  ;;  %v386_v17 = vpop.permute.xlu0 %385 }
 0x866   : > { %v388_v19 = vmul.f32 %v386_v17, %v839_v12  ;;  %v394_v20 = vmul.f32 %v392_v16, %v841_v13 }
 0x868   : > { %v389_v21 = vadd.f32 %v388_v19, %v383_v18 }
 0x86a   : > { %v395_v22 = vadd.f32 %v394_v20, %v389_v21 }
 0x86c   : > { %v396_v23 = vmul.f32 %v697_v7, %v395_v22 }
 0x86e   : > { %v397_v24 = vsel %vm209_vm3, %v396_v23, 0.0 }
 0x86f   : > { %398 = vadd.xlane.f32.xlu0 %v397_v24 }
 0x8f8   : > { %v399_v25 = vpop.xlane.xlu0 %398 }
 0x8f9   : > { %698 = vrcp.f32 %v399_v25 }
 0x906   : > { %v699_v26 = vpop.eup %698 }
 0x907   : > { %v402_v27 = vmul.f32 0.4, %v699_v26 }
 0x909   : > { %v403_v29 = vmul.f32 %v402_v27, %v396_v23 }
 0x90b   : > { %v404_v30 = vsub.f32 %v400_v28, %v403_v29 }
 0x90d   : > { %v405_v31 = vmul.f32 1.442695, %v404_v30  ;;  %v435_v49 = vadd.f32 %v404_v30, %v874_v56 }
 0x90f   : > { %700 = vpow2.f32 %v405_v31 }
 0x91c   : > { %v701_v32 = vpop.eup %700 }
 0x91d   : > { %409 = vperm.xlu1 %668, %v701_v32  }
 0x921   : > { %669 = vset.pattern.permute.xlu1 %v785_v62 }
 0x922   : > { %414 = vperm.xlu1 %669, %v701_v32  }
 0x926   : > { %670 = vset.pattern.permute.xlu1 %v784_v59 }
 0x927   : > { %420 = vperm.xlu1 %670, %v701_v32  }
 0x92b   : > { %671 = vset.pattern.permute.xlu1 %v786_v63 }
 0x92c   : > { %426 = vperm.xlu1 %671, %v701_v32  }
 0x930   : > { %673 = vset.pattern.permute.xlu1 %v785_v62 }
 0x998   : > { %v410_v33 = vpop.permute.xlu1 %409 }
 0x999   : > { %v412_v37 = vmul.f32 %v410_v33, %v835_v10 }
 0x99d   : > { %v415_v34 = vpop.permute.xlu1 %414 }
 0x99e   : > { %v417_v35 = vmul.f32 %v415_v34, %v837_v11 }
 0x9a0   : > { %v418_v39 = vadd.f32 %v417_v35, %v412_v37 }
 0x9a2   : > { %v421_v36 = vpop.permute.xlu1 %420 }
 0x9a3   : > { %v423_v38 = vmul.f32 %v421_v36, %v839_v12 }
 0x9a5   : > { %v424_v41 = vadd.f32 %v423_v38, %v418_v39 }
 0x9a7   : > { %v427_v40 = vpop.permute.xlu1 %426 }
 0x9a8   : > { %v429_v42 = vmul.f32 %v427_v40, %v841_v13 }
 0x9aa   : > { %v430_v43 = vadd.f32 %v429_v42, %v424_v41 }
 0x9ac   : > { %v431_v44 = vmul.f32 %v701_v32, %v430_v43 }
 0x9ae   : > { %v432_v45 = vsel %vm209_vm3, %v431_v44, 0.0 }
 0x9af   : > { %433 = vadd.xlane.f32.xlu1 %v432_v45 }
 0xa38   : > { %v434_v46 = vpop.xlane.xlu1 %433 }
 0xa39   : > { %702 = vrcp.f32 %v434_v46 }
 0xa46   : > { %v703_v47 = vpop.eup %702 }
 0xa47   : > { %v437_v48 = vmul.f32 0.4, %v703_v47 }
 0xa49   : > { %v438_v50 = vmul.f32 %v437_v48, %v431_v44 }
 0xa4b   : > { %v439_v51 = vsub.f32 %v435_v49, %v438_v50 }
 0xa4d   : > { %v440_v52 = vmul.f32 1.442695, %v439_v51  ;;  %v470_v15 = vadd.f32 %v439_v51, %v874_v56 }
 0xa4f   : > { %704 = vpow2.f32 %v440_v52 }
 0xa5c   : > { %v705_v53 = vpop.eup %704 }
 0xa5d   : > { %449 = vperm.xlu1 %673, %v705_v53   ;;  %444 = vperm.xlu0 %672, %v705_v53  }
 0xa61   : > { %674 = vset.pattern.permute.xlu1 %v784_v59  ;;  %675 = vset.pattern.permute.xlu0 %v786_v63 }
 0xa62   : > { %455 = vperm.xlu1 %674, %v705_v53   ;;  %461 = vperm.xlu0 %675, %v705_v53  }
 0xa66   : > { %676 = vset.pattern.permute.xlu0 %v783_v58  ;;  %681 = vset.pattern.permute.xlu1 %v785_v62 }
 0xad8   : > { %v450_v54 = vpop.permute.xlu1 %449  ;;  %v445_v55 = vpop.permute.xlu0 %444 }
 0xad9   : > { %v452_v57 = vmul.f32 %v450_v54, %v837_v11  ;;  %v447_v60 = vmul.f32 %v445_v55, %v835_v10 }
 0xadb   : > { %v453_v1 = vadd.f32 %v452_v57, %v447_v60 }
 0xadd   : > { %v456_v61 = vpop.permute.xlu1 %455  ;;  %v462_v0 = vpop.permute.xlu0 %461 }
 0xade   : > { %v458_v2 = vmul.f32 %v456_v61, %v839_v12  ;;  %v464_v4 = vmul.f32 %v462_v0, %v841_v13 }
 0xae0   : > { %v459_v3 = vadd.f32 %v458_v2, %v453_v1 }
 0xae2   : > { %v465_v5 = vadd.f32 %v464_v4, %v459_v3 }
 0xae4   : > { %v466_v6 = vmul.f32 %v705_v53, %v465_v5 }
 0xae6   : > { %v467_v7 = vsel %vm209_vm3, %v466_v6, 0.0 }
 0xae7   : > { %468 = vadd.xlane.f32.xlu1 %v467_v7 }
 0xb70   : > { %v469_v8 = vpop.xlane.xlu1 %468 }
 0xb71   : > { %706 = vrcp.f32 %v469_v8 }
 0xb7e   : > { %v707_v9 = vpop.eup %706 }
 0xb7f   : > { %v472_v14 = vmul.f32 0.4, %v707_v9 }
 0xb81   : > { %v473_v16 = vmul.f32 %v472_v14, %v466_v6 }
 0xb83   : > { %v474_v17 = vsub.f32 %v470_v15, %v473_v16 }
 0xb85   : > { %v475_v18 = vmul.f32 1.442695, %v474_v17  ;;  %v505_v34 = vadd.f32 %v474_v17, %v874_v56 }
 0xb87   : > { %708 = vpow2.f32 %v475_v18 }
 0xb94   : > { %v709_v19 = vpop.eup %708 }
 0xb95   : > { %479 = vperm.xlu0 %676, %v709_v19  }
 0xb99   : > { %677 = vset.pattern.permute.xlu0 %v785_v62 }
 0xb9a   : > { %484 = vperm.xlu0 %677, %v709_v19  }
 0xb9e   : > { %678 = vset.pattern.permute.xlu0 %v784_v59 }
 0xb9f   : > { %490 = vperm.xlu0 %678, %v709_v19  }
 0xba3   : > { %679 = vset.pattern.permute.xlu0 %v786_v63 }
 0xba4   : > { %496 = vperm.xlu0 %679, %v709_v19  }
 0xba8   : > { %680 = vset.pattern.permute.xlu0 %v783_v58 }
 0xc10   : > { %v480_v20 = vpop.permute.xlu0 %479 }
 0xc11   : > { %v482_v24 = vmul.f32 %v480_v20, %v835_v10 }
 0xc15   : > { %v485_v21 = vpop.permute.xlu0 %484 }
 0xc16   : > { %v487_v22 = vmul.f32 %v485_v21, %v837_v11 }
 0xc18   : > { %v488_v26 = vadd.f32 %v487_v22, %v482_v24 }
 0xc1a   : > { %v491_v23 = vpop.permute.xlu0 %490 }
 0xc1b   : > { %v493_v25 = vmul.f32 %v491_v23, %v839_v12 }
 0xc1d   : > { %v494_v27 = vadd.f32 %v493_v25, %v488_v26 }
 0xc1f   : > { %v497_v62 = vpop.permute.xlu0 %496 }
 0xc20   : > { %v499_v28 = vmul.f32 %v497_v62, %v841_v13 }
 0xc22   : > { %v500_v29 = vadd.f32 %v499_v28, %v494_v27 }
 0xc24   : > { %v501_v30 = vmul.f32 %v709_v19, %v500_v29 }
 0xc26   : > { %v502_v31 = vsel %vm209_vm3, %v501_v30, 0.0 }
 0xc27   : > { %503 = vadd.xlane.f32.xlu1 %v502_v31 }
 0xcb0   : > { %v504_v58 = vpop.xlane.xlu1 %503 }
 0xcb1   : > { %710 = vrcp.f32 %v504_v58 }
 0xcbe   : > { %v711_v32 = vpop.eup %710 }
 0xcbf   : > { %v507_v33 = vmul.f32 0.4, %v711_v32 }
 0xcc1   : > { %v508_v35 = vmul.f32 %v507_v33, %v501_v30 }
 0xcc3   : > { %v509_v36 = vsub.f32 %v505_v34, %v508_v35 }
 0xcc5   : > { %v510_v37 = vmul.f32 1.442695, %v509_v36  ;;  %v540_v53 = vadd.f32 %v509_v36, %v874_v56 }
 0xcc7   : > { %712 = vpow2.f32 %v510_v37 }
 0xcd4   : > { %v713_v38 = vpop.eup %712 }
 0xcd5   : > { %519 = vperm.xlu1 %681, %v713_v38   ;;  %514 = vperm.xlu0 %680, %v713_v38  }
 0xcd9   : > { %682 = vset.pattern.permute.xlu0 %v784_v59 }
 0xcda   : > { %525 = vperm.xlu0 %682, %v713_v38  }
 0xcde   : > { %683 = vset.pattern.permute.xlu0 %v786_v63 }
 0xcdf   : > { %531 = vperm.xlu0 %683, %v713_v38  }
 0xd50   : > { %v515_v39 = vpop.permute.xlu0 %514  ;;  %v520_v40 = vpop.permute.xlu1 %519 }
 0xd51   : > { %v522_v41 = vmul.f32 %v520_v40, %v837_v11  ;;  %v517_v42 = vmul.f32 %v515_v39, %v835_v10 }
 0xd53   : > { %v523_v45 = vadd.f32 %v522_v41, %v517_v42 }
 0xd55   : > { %v526_v43 = vpop.permute.xlu0 %525 }
 0xd56   : > { %v528_v44 = vmul.f32 %v526_v43, %v839_v12 }
 0xd58   : > { %v529_v47 = vadd.f32 %v528_v44, %v523_v45 }
 0xd5a   : > { %v532_v46 = vpop.permute.xlu0 %531 }
 0xd5b   : > { %v534_v48 = vmul.f32 %v532_v46, %v841_v13 }
 0xd5d   : > { %v535_v49 = vadd.f32 %v534_v48, %v529_v47 }
 0xd5f   : > { %v536_v59 = vmul.f32 %v713_v38, %v535_v49 }
 0xd61   : > { %v537_v50 = vsel %vm209_vm3, %v536_v59, 0.0 }
 0xd62   : > { %538 = vadd.xlane.f32.xlu1 %v537_v50 }
 0xdeb   : > { %v539_v63 = vpop.xlane.xlu1 %538 }
 0xdec   : > { %714 = vrcp.f32 %v539_v63 }
 0xdf9   : > { %v715_v51 = vpop.eup %714 }
 0xdfa   : > { %v542_v52 = vmul.f32 0.4, %v715_v51 }
 0xdfc   : > { %v543_v54 = vmul.f32 %v542_v52, %v536_v59 }
 0xdfe   : > { %v544_v55 = vsub.f32 %v540_v53, %v543_v54 }
 0xe00   : > { %v545_v57 = vsel %vm209_vm3, %v544_v55, -inf }
 0xe01   : > { %546 = vmax.xlane.f32.xlu0 %v545_v57 }
 0xe89   :  { %262 = sbr.rel (!%p260_p5) target bundleno = 1051 (0x41b), region = 55 }
 0xe8a   : > { %v547_v60 = vpop.xlane.xlu0 %546 }
 0xe8b   : > { %v548_v61 = vsub.f32 %v544_v55, %v547_v60  }
 0xe8d   : > { %v983_v57 = vmov %v548_v61  ;;  %v549_v0 = vsel (%p260_p5), %vm209_vm3, %v548_v61, -inf }
 0xe8e   :  { %550 = vmax.xlane.f32.xlu0 %v549_v0 }
 0xf17   :  { %v551_v1 = vpop.xlane.xlu0 %550 }
 0xf18   :  { %v552_v2 = vsub.f32 %v548_v61, %v551_v1 }
 0xf1a   :  { %v553_v3 = vmul.f32 1.442695, %v552_v2 }
 0xf1c   :  { %716 = vpow2.f32 %v553_v3 }
 0xf29   :  { %v717_v4 = vpop.eup %716 }
 0xf2a   :  { %v555_v5 = vsel %vm209_vm3, %v717_v4, 0.0 }
 0xf2b   :  { %556 = vadd.xlane.f32.xlu0 %v555_v5 }
 0xfb4   :  { %v557_v6 = vpop.xlane.xlu0 %556 }
 0xfb5   :  { %718 = vrcp.f32 %v557_v6 }
 0xfc2   :  { %v719_v7 = vpop.eup %718 }
 0xfc3   :  { %v559_v8 = vmul.f32 %v719_v7, %v717_v4 }
 0xfc5   :  { %560 = vst.msk [vmem:[#allocation5] sm:$0x3] %vm209_vm3, %v559_v8 }
 0xfc6   :  { %751 = shalt.err (!%p748_p10)
}
 0xfc7   :  { %570 = dma.vmem_to_hbm [thread:$0]  %s568_s4, 32, %s982_s6, [#allocation4]  }
 0xfc8   :  { %770 = dma.done.wait [#allocation4], 32  }
 0xfc9   :  { %771 = vsyncadd [#allocation4], 4294967264 }
 0xfca   :  { %574 = vsyncpa [#allocation3], 1 }
 0xfcb   :  { %575 = vsyncpa [#allocation4], 1 }

</bundles_post_ra>
